<compile_context>
chip_gen: v5e
topology: v5e:2x2
jax: 0.10.0
libtpu: 0.0.40
codegen_flags: <defaults>
</compile_context>

<pallas_src>
import functools

import jax
import jax.numpy as jnp
from jax import lax
from jax.experimental import pallas as pl
from jax.experimental.pallas import tpu as pltpu

EPS = 1e-5                 # PyTorch LayerNorm default
MXU_DTYPE = jnp.bfloat16   # MXU operand dtype (accumulation stays float32)


# ----------------------------------------------------------------------------
# small in-kernel helpers (pure jnp, traced inside the Pallas kernel)
# ----------------------------------------------------------------------------
def _dot(a, b):
    """(M, K) @ (K, N) on the MXU, bf16 operands, f32 accumulation."""
    return jnp.dot(a.astype(MXU_DTYPE), b.astype(MXU_DTYPE),
                   preferred_element_type=jnp.float32)


def _ln(x, g, b):
    """LayerNorm over the channel (sublane) axis of a (C, Nq) tensor."""
    mu = jnp.mean(x, axis=0, keepdims=True)
    var = jnp.mean(jnp.square(x - mu), axis=0, keepdims=True)
    return (x - mu) * lax.rsqrt(var + EPS) * g + b


# ----------------------------------------------------------------------------
# fused SAFECountMultiBlock kernel: one grid step == one SAFECountBlock
# ----------------------------------------------------------------------------
def _safecount_block_kernel(tgt0_ref, kh_ref, vf_ref,
                            ain_w_ref, ain_b_ref, aln_g_ref, aln_b_ref,
                            aout_w_ref, aout_b_ref,
                            c1_w_ref, c1_b_ref, c2_w_ref, c2_b_ref,
                            ln1_g_ref, ln1_b_ref, ln2_g_ref, ln2_b_ref,
                            out_ref, *,
                            H, W, mn, mn_pad, head, taps, scale,
                            roll_matches_jnp):
    """Layout: channels on sublanes, flattened H*W on lanes.

    tgt0_ref : (C, Nq)                    initial target features (used at b==0)
    kh_ref   : (1, head*mn_pad, taps*C)   per-head-masked key patches (t-major cols)
    vf_ref   : (1, C, taps*head*mn_pad)   spatially-flipped, head-masked values
    c1_w_ref : (1, mid, taps*C)           3x3 conv1 weights,  column = t*C   + cin
    c2_w_ref : (1, C,  taps*mid)          3x3 conv2 weights,  column = t*mid + cmid
    out_ref  : (C, Nq)                    VMEM-resident carry across the block grid
    """
    nq = H * W
    f32 = jnp.float32

    # out_ref carries tgt across the num_blocks grid axis (never leaves VMEM).
    @pl.when(pl.program_id(0) == 0)
    def _():
        out_ref[...] = tgt0_ref[...]

    tgt = out_ref[...]                                       # (C, Nq) f32

    # 3x3 tap offsets + zero-padding validity masks on the flattened lane axis.
    offs = [(di - 1, dj - 1) for di in range(3) for dj in range(3)]
    pos = lax.broadcasted_iota(jnp.int32, (1, nq), 1)
    row = pos // W
    col = pos - row * W
    masks = []
    for dy, dx in offs:
        ok = ((row + dy >= 0) & (row + dy < H) &
              (col + dx >= 0) & (col + dx < W))
        masks.append(ok.astype(f32))

    def shifted(x, t):
        """Zero-padded spatial shift for tap t: out[:, p] = x[:, p + dy*W + dx]."""
        dy, dx = offs[t]
        d = dy * W + dx
        if d == 0:
            return x
        amt = (-d) % nq if roll_matches_jnp else d % nq
        return pltpu.roll(x, amt, axis=1) * masks[t]

    def im2col(x):
        # (R, Nq) -> (taps*R, Nq); rows ordered [tap, row-of-x]; aligned blocks.
        return jnp.concatenate([shifted(x, t) for t in range(taps)], axis=0)

    # ---------------- SimilarityWeightedAggregation ----------------
    # query: in_conv (1x1) + LayerNorm over channels
    q = _ln(_dot(ain_w_ref[0], tgt) + ain_b_ref[0], aln_g_ref[0], aln_b_ref[0])
    q_all = im2col(q)                                        # (taps*C, Nq)

    # per-head similarity, all taps merged into one large-K matmul
    s = _dot(kh_ref[0], q_all) * scale                       # (head*mn_pad, Nq)

    # exemplar-padding rows -> -inf so they vanish from both normalizations
    ridx = lax.broadcasted_iota(jnp.int32, (head * mn_pad, nq), 0)
    s = jnp.where(ridx % mn_pad >= mn, -1e30, s)

    attn_parts = []
    for h in range(head):
        sh = s[h * mn_pad:(h + 1) * mn_pad, :]
        # sn = exp(s) / max_spatial exp(s)   (exact; stabilized per exemplar row)
        sn = jnp.exp(sh - jnp.max(sh, axis=1, keepdims=True))
        # en = exp(s) / sum_exemplars exp(s) (stabilized per spatial position)
        e = jnp.exp(sh - jnp.max(sh, axis=0, keepdims=True))
        en = e * pl.reciprocal(jnp.sum(e, axis=0, keepdims=True), approx=True)
        attn_parts.append(sn * en)
    attn = jnp.concatenate(attn_parts, axis=0)               # (head*mn_pad, Nq)

    # similarity-weighted aggregation (transposed-conv scatter), taps merged
    feat = _dot(vf_ref[0], im2col(attn))                     # (C, Nq)
    tgt2 = _dot(aout_w_ref[0], feat) + aout_b_ref[0]         # out_conv (1x1)

    # ---------------- residual + norm1 ----------------
    x1 = _ln(tgt + tgt2, ln1_g_ref[0], ln1_b_ref[0])

    # ---------------- FFN: 3x3 conv -> relu -> 3x3 conv ----------------
    h1 = jnp.maximum(_dot(c1_w_ref[0], im2col(x1)) + c1_b_ref[0], 0.0)
    y2 = _dot(c2_w_ref[0], im2col(h1)) + c2_b_ref[0]

    # ---------------- residual + norm2 ----------------
    out_ref[...] = _ln(x1 + y2, ln2_g_ref[0], ln2_b_ref[0])


def make_forward_call(num_blocks, emb, mid, mn, mn_pad, head, taps, H, W, scale,
                      roll_matches_jnp):
    nq = H * W
    kernel = functools.partial(
        _safecount_block_kernel, H=H, W=W, mn=mn, mn_pad=mn_pad, head=head,
        taps=taps, scale=scale, roll_matches_jnp=roll_matches_jnp)

    def bspec(r, c):
        # per-block stacked parameter (num_blocks, r, c): fetch slice b each step
        return pl.BlockSpec((1, r, c), lambda b: (b, 0, 0))

    def call(tgt0, khT, vfT, p):
        # TODO(synk): at realistic sizes (H,W >= 64) add a second, "parallel"
        #             Nq-tile grid axis (two-pass spatial max + W-row halo for
        #             the scatter) to use v7x's second TensorCore and stay
        #             inside its 64 MiB VMEM.
        return pl.pallas_call(
            kernel,
            out_shape=jax.ShapeDtypeStruct((emb, nq), jnp.float32),
            grid_spec=pltpu.PrefetchScalarGridSpec(
                num_scalar_prefetch=0,
                grid=(num_blocks,),
                in_specs=[
                    pl.BlockSpec((emb, nq), lambda b: (0, 0)),   # tgt0
                    bspec(head * mn_pad, taps * emb),            # khT
                    bspec(emb, taps * head * mn_pad),            # vfT
                    bspec(emb, emb),                             # aggt in_conv W^T
                    bspec(emb, 1),                               # aggt in_conv b
                    bspec(emb, 1), bspec(emb, 1),                # aggt LN g, b
                    bspec(emb, emb),                             # aggt out_conv W^T
                    bspec(emb, 1),                               # aggt out_conv b
                    bspec(mid, taps * emb),                      # conv1 W^T
                    bspec(mid, 1),                               # conv1 b
                    bspec(emb, taps * mid),                      # conv2 W^T
                    bspec(emb, 1),                               # conv2 b
                    bspec(emb, 1), bspec(emb, 1),                # norm1 g, b
                    bspec(emb, 1), bspec(emb, 1),                # norm2 g, b
                ],
                out_specs=pl.BlockSpec((emb, nq), lambda b: (0, 0)),
            ),
            compiler_params=pltpu.CompilerParams(
                dimension_semantics=("arbitrary",),
                vmem_limit_bytes=32 * 1024 * 1024,
            ),
        )(tgt0, khT, vfT,
          p["ain_wT"], p["ain_b"], p["aln_g"], p["aln_b"],
          p["aout_wT"], p["aout_b"],
          p["c1_wT"], p["c1_b"], p["c2_wT"], p["c2_b"],
          p["ln1_g"], p["ln1_b"], p["ln2_g"], p["ln2_b"])

    return call


# ----------------------------------------------------------------------------
# Glue (plain JAX, runs once per forward)
# ----------------------------------------------------------------------------
def safecount_forward(img_feat, box_feats, params, *, num_blocks, head, mid_dim,
                      roll_matches_jnp=True):
    """
    img_feat : (1, out_dim, H, W)     synthetic backbone features of the image
    box_feats: (MN, out_dim, 3, 3)    synthetic pooled ROI backbone features
    returns  : (1, embed_dim, H, W)   output of SAFECountMultiBlock
    """
    _, out_dim, H, W = img_feat.shape
    MN, _, hp, wp = box_feats.shape
    # TODO(synk): general hp/wp exemplar patch sizes need per-size tap offsets.
    assert hp == 3 and wp == 3, "3x3 pooled exemplar patches assumed"
    emb = params["top_in_w"].shape[1]
    assert emb % head == 0
    nq, taps = H * W, hp * wp
    hd = emb // head
    mn_pad = ((MN + 7) // 8) * 8            # exemplar axis padded to sublane multiple
    scale = float(emb * hp * wp) ** (-0.5)
    B = num_blocks
    bp = params["blocks"]

    # ---- top-level 1x1 in_conv (tiny; left to XLA) ---------------------------
    # TODO(synk): backbone, crop_roi_feat/pooling, exemplar_scales and the
    #             count_regressor are external modules; synthetic features in.
    tgt0 = (jnp.einsum("op,oc->cp", img_feat[0].reshape(out_dim, nq),
                       params["top_in_w"])
            + params["top_in_b"][:, None])                              # (C, Nq)
    box_emb = (jnp.einsum("moab,oc->cabm", box_feats, params["top_in_w"])
               + params["top_in_b"][:, None, None, None])
    fb = box_emb.reshape(emb, taps * MN)                                # cols t*MN+m

    # ---- per-block exemplar key/value prep (27 pixels; plain JAX, once) ------
    pre = (jnp.einsum("bio,ip->bop", bp["aggt_in_w"], fb)
           + bp["aggt_in_b"][:, :, None])                               # (B, C, taps*MN)
    mu = pre.mean(axis=1, keepdims=True)
    var = jnp.mean(jnp.square(pre - mu), axis=1, keepdims=True)
    kk = ((pre - mu) * lax.rsqrt(var + EPS) * bp["aggt_ln_g"][:, :, None]
          + bp["aggt_ln_b"][:, :, None])                                # keys (LN'd)
    vv = pre                                                            # values (no LN)

    chan = jnp.arange(emb)
    hmask = jnp.stack([((chan >= h * hd) & (chan < (h + 1) * hd)).astype(jnp.float32)
                       for h in range(head)])                           # (head, C)

    # keys:  khT[b, h*mn_pad+m, t*C+c] = k[b, c, t*MN+m] * 1[c in head h]
    kr = kk.reshape(B, emb, taps, MN).transpose(0, 3, 2, 1)             # (B, MN, taps, C)
    khT = jnp.stack([(kr * hmask[h]).reshape(B, MN, taps * emb)
                     for h in range(head)], axis=1)                     # (B, head, MN, taps*C)
    khT = jnp.pad(khT, ((0, 0), (0, 0), (0, mn_pad - MN), (0, 0)))
    khT = khT.reshape(B, head * mn_pad, taps * emb)

    # values (spatially flipped for the transposed-conv scatter):
    #   vfT[b, c, t*head*mn_pad + h*mn_pad + m] = v[b, c, (taps-1-t)*MN+m] * 1[c in h]
    vr = vv.reshape(B, emb, taps, MN)[:, :, ::-1, :]
    vfh = vr[:, :, :, None, :] * hmask.T[None, :, None, :, None]        # (B, C, taps, head, MN)
    vfh = jnp.pad(vfh, ((0, 0), (0, 0), (0, 0), (0, 0), (0, mn_pad - MN)))
    vfT = vfh.reshape(B, emb, taps * head * mn_pad)

    p = {
        "ain_wT": bp["aggt_in_w"].transpose(0, 2, 1),
        "ain_b": bp["aggt_in_b"][:, :, None],
        "aln_g": bp["aggt_ln_g"][:, :, None],
        "aln_b": bp["aggt_ln_b"][:, :, None],
        "aout_wT": bp["aggt_out_w"].transpose(0, 2, 1),
        "aout_b": bp["aggt_out_b"][:, :, None],
        "c1_wT": bp["conv1_w"].transpose(0, 3, 1, 2).reshape(B, mid_dim, taps * emb),
        "c1_b": bp["conv1_b"][:, :, None],
        "c2_wT": bp["conv2_w"].transpose(0, 3, 1, 2).reshape(B, emb, taps * mid_dim),
        "c2_b": bp["conv2_b"][:, :, None],
        "ln1_g": bp["ln1_g"][:, :, None],
        "ln1_b": bp["ln1_b"][:, :, None],
        "ln2_g": bp["ln2_g"][:, :, None],
        "ln2_b": bp["ln2_b"][:, :, None],
    }

    call = make_forward_call(num_blocks, emb, mid_dim, MN, mn_pad, head, taps,
                             H, W, scale, roll_matches_jnp)
    out = call(tgt0, khT, vfT, p)                                       # (C, Nq)
    return out.reshape(emb, H, W)[None]                                 # NCHW


def _roll_matches_jnp():
    """pltpu.roll is specified to follow jnp.roll; probe once at runtime so the
    kernel stays correct even if the rotation convention ever drifts."""
    def k(x_ref, o_ref):
        o_ref[...] = pltpu.roll(x_ref[...], 3, axis=1)
    x = jnp.arange(8 * 128, dtype=jnp.float32).reshape(8, 128)
    y = pl.pallas_call(k, out_shape=jax.ShapeDtypeStruct((8, 128), jnp.float32))(x)
    return bool(jnp.array_equal(y, jnp.roll(x, 3, axis=1)))


# ----------------------------------------------------------------------------
# Pure-JAX reference (independent spatial handling; follows the PyTorch module)
# ----------------------------------------------------------------------------
def reference_forward(img_feat, box_feats, params, *, num_blocks, head, mid_dim):
    del mid_dim
    _, out_dim, H, W = img_feat.shape
    MN, _, hp, wp = box_feats.shape
    emb = params["top_in_w"].shape[1]
    hd = emb // head
    scale = float(emb * hp * wp) ** (-0.5)
    bp = params["blocks"]

    def conv1x1(x, w, b):                       # x: (Cin, H, W), w: (Cin, Cout)
        return jnp.einsum("ihw,io->ohw", x, w) + b[:, None, None]

    def ln_c(x, g, b):                          # LayerNorm over channels
        mu = x.mean(axis=0, keepdims=True)
        var = jnp.mean(jnp.square(x - mu), axis=0, keepdims=True)
        return (x - mu) / jnp.sqrt(var + EPS) * g[:, None, None] + b[:, None, None]

    tgt = conv1x1(img_feat[0], params["top_in_w"], params["top_in_b"])
    src = (jnp.einsum("miab,io->moab", box_feats, params["top_in_w"])
           + params["top_in_b"][None, :, None, None])

    for bi in range(num_blocks):
        q = ln_c(conv1x1(tgt, bp["aggt_in_w"][bi], bp["aggt_in_b"][bi]),
                 bp["aggt_ln_g"][bi], bp["aggt_ln_b"][bi])
        keys, vals = [], []
        for m in range(MN):
            pre = conv1x1(src[m], bp["aggt_in_w"][bi], bp["aggt_in_b"][bi])
            keys.append(ln_c(pre, bp["aggt_ln_g"][bi], bp["aggt_ln_b"][bi]))
            vals.append(pre)

        qpad = jnp.pad(q, ((0, 0), (1, 1), (1, 1)))
        attns = jnp.zeros((head, MN, H, W), jnp.float32)
        for h in range(head):
            qh = qpad[h * hd:(h + 1) * hd]
            for m in range(MN):
                kh = keys[m][h * hd:(h + 1) * hd]
                sc = jnp.zeros((H, W), jnp.float32)
                for a in range(hp):
                    for b2 in range(wp):
                        sc = sc + jnp.einsum("chw,c->hw",
                                             qh[:, a:a + H, b2:b2 + W], kh[:, a, b2])
                attns = attns.at[h, m].set(sc)
        attns = jnp.exp(attns * scale)
        attns_sn = attns / attns.max(axis=2, keepdims=True).max(axis=3, keepdims=True)
        attns_en = attns / attns.sum(axis=1, keepdims=True)
        attn = attns_sn * attns_en

        feats = jnp.zeros((emb, H, W), jnp.float32)
        for m in range(MN):
            for h in range(head):
                wpad = jnp.pad(attn[h, m], ((1, 1), (1, 1)))
                vh = vals[m][h * hd:(h + 1) * hd]
                acc = jnp.zeros((hd, H, W), jnp.float32)
                for a in range(hp):
                    for b2 in range(wp):
                        acc = acc + (wpad[None, a:a + H, b2:b2 + W]
                                     * vh[:, hp - 1 - a, wp - 1 - b2][:, None, None])
                feats = feats.at[h * hd:(h + 1) * hd].add(acc)
        tgt2 = conv1x1(feats, bp["aggt_out_w"][bi], bp["aggt_out_b"][bi])
        tgt = ln_c(tgt + tgt2, bp["ln1_g"][bi], bp["ln1_b"][bi])

        def conv3x3(x, w_tco, b):               # w: (9, Cin, Cout), tap = a*3 + b
            xp = jnp.pad(x, ((0, 0), (1, 1), (1, 1)))
            acc = jnp.zeros((w_tco.shape[-1], H, W), jnp.float32)
            for a in range(3):
                for b2 in range(3):
                    acc = acc + jnp.einsum("chw,co->ohw",
                                           xp[:, a:a + H, b2:b2 + W], w_tco[a * 3 + b2])
            return acc + b[:, None, None]

        mid = jax.nn.relu(conv3x3(tgt, bp["conv1_w"][bi], bp["conv1_b"][bi]))
        tgt2 = conv3x3(mid, bp["conv2_w"][bi], bp["conv2_b"][bi])
        tgt = ln_c(tgt + tgt2, bp["ln2_g"][bi], bp["ln2_b"][bi])
    return tgt[None]


# ----------------------------------------------------------------------------
# Main
# ----------------------------------------------------------------------------
if __name__ == "__main__":
    OUT_DIM, EMBED, MID, HEAD, BLOCKS = 16, 32, 32, 2, 2
    H = W = 16           # spatial size of image feature map (Nq = 256 lanes)
    MN = 3               # number of exemplars
    HP = WP = 3          # pooled exemplar patch size (must be 3)

    key = jax.random.PRNGKey(0)
    ks = jax.random.split(key, 12)

    def w(k, shape, s=0.05):
        return jax.random.normal(k, shape, jnp.float32) * s

    params = {
        "top_in_w": w(ks[0], (OUT_DIM, EMBED)),
        "top_in_b": w(ks[1], (EMBED,)),
        # per-block parameters stacked on a leading num_blocks axis
        "blocks": {
            "aggt_in_w": w(ks[2], (BLOCKS, EMBED, EMBED)),
            "aggt_in_b": w(ks[3], (BLOCKS, EMBED)),
            "aggt_ln_g": jnp.ones((BLOCKS, EMBED), jnp.float32),
            "aggt_ln_b": jnp.zeros((BLOCKS, EMBED), jnp.float32),
            "aggt_out_w": w(ks[4], (BLOCKS, EMBED, EMBED)),
            "aggt_out_b": w(ks[5], (BLOCKS, EMBED)),
            "conv1_w": w(ks[6], (BLOCKS, 9, EMBED, MID)),   # tap-major (t, cin, cout)
            "conv1_b": w(ks[7], (BLOCKS, MID)),
            "conv2_w": w(ks[8], (BLOCKS, 9, MID, EMBED)),
            "conv2_b": w(ks[9], (BLOCKS, EMBED)),
            "ln1_g": jnp.ones((BLOCKS, EMBED), jnp.float32),
            "ln1_b": jnp.zeros((BLOCKS, EMBED), jnp.float32),
            "ln2_g": jnp.ones((BLOCKS, EMBED), jnp.float32),
            "ln2_b": jnp.zeros((BLOCKS, EMBED), jnp.float32),
        },
    }

    img_feat = jax.random.normal(ks[10], (1, OUT_DIM, H, W), jnp.float32)
    box_feats = jax.random.normal(ks[11], (MN, OUT_DIM, HP, WP), jnp.float32)

    roll_ok = _roll_matches_jnp()

    fwd = jax.jit(functools.partial(safecount_forward, num_blocks=BLOCKS,
                                    head=HEAD, mid_dim=MID,
                                    roll_matches_jnp=roll_ok))
    out = fwd(img_feat, box_feats, params)
    jax.block_until_ready(out)
    assert out.shape == (1, EMBED, H, W), out.shape
    assert bool(jnp.all(jnp.isfinite(out)))

    # pure-JAX reference check (kernel uses bf16 MXU operands -> loose tolerance)
    ref = jax.jit(functools.partial(reference_forward, num_blocks=BLOCKS,
                                    head=HEAD, mid_dim=MID))(img_feat, box_feats, params)
    err = float(jnp.max(jnp.abs(out - ref)))
    assert err < 0.15, f"max |kernel - reference| = {err}"

    print("KERNEL_OK")
</pallas_src>

<mosaic_0001>
module attributes {stable_mosaic.version = 11 : i64} {
  func.func @k(%arg0: memref<8x128xf32, #tpu.memory_space<vmem>>, %arg1: memref<8x128xf32, #tpu.memory_space<vmem>>) attributes {dimension_semantics = [], scalar_prefetch = 0 : i64, scratch_operands = 0 : i64, tpu.core_type = #tpu.core_type<tc>} {
    %c0 = arith.constant 0 : index
    %c0_0 = arith.constant 0 : index
    %0 = vector.load %arg0[%c0, %c0_0] : memref<8x128xf32, #tpu.memory_space<vmem>>, vector<8x128xf32>
    %c3_i32 = arith.constant 3 : i32
    %1 = tpu.dynamic_rotate %0 by %c3_i32 dim 1 : vector<8x128xf32>, i32 -> vector<8x128xf32>
    %c0_1 = arith.constant 0 : index
    %c0_2 = arith.constant 0 : index
    %2 = vector.load %arg1[%c0_1, %c0_2] : memref<8x128xf32, #tpu.memory_space<vmem>>, vector<8x128xf32>
    tpu.vector_store %arg1[%c0_1, %c0_2], %1 {strides = array<i32>} : memref<8x128xf32, #tpu.memory_space<vmem>>, vector<8x128xf32>,
    return
  }
}

</mosaic_0001>

<bundles_post_ra>
// kernel: tpu_custom_call.1
= control target key start
LH: loop header
LB: loop body
LE: loop exit
PB: predicated region body
PF: predicated region fallthrough
CT: control target
= control target key end

     0   :  { %6 = vsyncpa [#allocation3], 0  ;;  %s118_s0 = inlined_call_operand.hbm [shape: f32[8,128], index: 0, kind: input, shape index: {}]   ;;  %s119_s1 = inlined_call_operand.hbm [shape: f32[8,128], index: 1, kind: output, shape index: {}]  }
   0x1   :  { %7 = vsyncpa [#allocation4], 0  ;;  %s13_s8 = sshll.u32 %s118_s0, 4  ;;  %s99_s9 = smov [#allocation2]   ;;  %s14_s8 = int_to_ptr.hbm [resolvable:$true] %s13_s8 }
   0x2   :  { %s15_s10 = sshll.u32 %s99_s9, 4  ;;  %s16_s10 = int_to_ptr.vmem [resolvable:$true] %s15_s10 }
   0x3   :  { %18 = dma.hbm_to_vmem [thread:$0]  %s14_s8, 128, %s16_s10, [#allocation3]  }
   0x4   :  { %95 = dma.done.wait [#allocation3], 128  }
   0x5   :  { %96 = vsyncadd [#allocation3], 4294967168  ;;  %v23_v0 = vld [vmem:[#allocation2] sm:$0xff]  ;;  %s100_s11 = smov 3   ;;  %s101_s12 = smov [#allocation5]  }
   0x6   :  { %24 = vrot.lane.b32.xlu0 %v23_v0, %s100_s11  ;;  %s32_s13 = sshll.u32 %s101_s12, 4  ;;  %s34_s16 = sshll.u32 %s119_s1, 4  ;;  %s33_s13 = int_to_ptr.vmem [resolvable:$true] %s32_s13  ;;  %s35_s16 = int_to_ptr.hbm [resolvable:$true] %s34_s16 }
  0x78   :  { %v25_v1 = vpop.permute.xlu0 %24 }
  0x79   :  { %26 = vst [vmem:[#allocation5] sm:$0xff] %v25_v1 }
  0x7a   :  { %37 = dma.vmem_to_hbm [thread:$0]  %s33_s13, 128, %s35_s16, [#allocation4]  }
  0x7b   :  { %97 = dma.done.wait [#allocation4], 128  }
  0x7c   :  { %98 = vsyncadd [#allocation4], 4294967168 }
  0x7d   :  { %42 = vsyncpa [#allocation3], 1 }
  0x7e   :  { %43 = vsyncpa [#allocation4], 1 }

</bundles_post_ra>
